<compile_context>
chip_gen: v7x
topology: tpu7x:2x2x1
jax: 0.10.0
libtpu: 0.0.40
codegen_flags: <defaults>
</compile_context>

<pallas_src>
import functools

import jax
import jax.numpy as jnp
from jax.experimental import pallas as pl
from jax.experimental.pallas import tpu as pltpu


def _round_up(x, m):
    return (x + m - 1) // m * m


def _rel_quat_kernel(pt4_ref, x_ref, o_ref):
    """One block per grid step.

    pt4_ref : (4*Vp, 4*Vp) f32     block-diagonal; each block PT[w, v] = P[v, w]
    x_ref   : (4, Vp, Lb)  in-dt   input quaternion channels (x, y, z, w)
    o_ref   : (4, Vp, Lb)  in-dt   output channels (nb, nc, nd, na)
    """
    _, vp, lb = x_ref.shape
    xq = x_ref[...].astype(jnp.float32)                 # cast in-registers

    # Fused joint mixing: p[c] = PT @ x[c] for all 4 channels in one MXU op.
    xs = xq.reshape(4 * vp, lb)                          # vp % 8 == 0 -> free view
    ps = jnp.dot(pt4_ref[...], xs, preferred_element_type=jnp.float32)
    p0 = ps[0 * vp:1 * vp]
    p1 = ps[1 * vp:2 * vp]
    p2 = ps[2 * vp:3 * vp]
    p3 = ps[3 * vp:4 * vp]

    # Quaternion inverse of the parent quaternion: conjugate / (|p|^2 + 1e-4).
    norm = p0 * p0 + p1 * p1 + p2 * p2 + p3 * p3 + 0.0001
    inv = pl.reciprocal(norm, approx=True)               # EUP (otherwise-idle slot)
    inv = inv * (2.0 - norm * inv)                       # Newton-Raphson step 1
    inv = inv * (2.0 - norm * inv)                       # Newton-Raphson step 2
    b = -p0 * inv                                        # p_inv x
    c = -p1 * inv                                        # p_inv y
    d = -p2 * inv                                        # p_inv z
    a = p3 * inv                                         # p_inv w (scalar)

    X = xq[0]
    Y = xq[1]
    Z = xq[2]
    t = xq[3]

    na = a * t - b * X - c * Y - d * Z
    nb = b * t + a * X + c * Z - d * Y
    nc = c * t + a * Y + b * Z - d * X
    nd = d * t + Z * a + c * X - b * Y

    # channel order matches torch.stack((nb, nc, nd, na), dim=1)
    o_ref[0] = nb.astype(o_ref.dtype)
    o_ref[1] = nc.astype(o_ref.dtype)
    o_ref[2] = nd.astype(o_ref.dtype)
    o_ref[3] = na.astype(o_ref.dtype)


def _block_diag_pt4(P, Vp):
    """(4*Vp, 4*Vp) block-diagonal matrix with PT = P.T on each diagonal block."""
    PT = jnp.asarray(P, jnp.float32).T                   # PT[w, v] = P[v, w]
    V = PT.shape[0]
    if Vp != V:
        PT = jnp.pad(PT, ((0, Vp - V), (0, Vp - V)))
    return jnp.kron(jnp.eye(4, dtype=jnp.float32), PT)


@functools.partial(jax.jit, static_argnames=("max_lane_block", "vmem_limit_bytes"))
def relative_quaternion(x, P, *, max_lane_block=8192, vmem_limit_bytes=None):
    """x: (N, 4, V, T), P: (V, V) -> (N, 4, V, T) in x.dtype."""
    N, C, V, T = x.shape
    assert C == 4, "expected quaternion channel dim of size 4"
    dt = x.dtype
    itemsize = jnp.dtype(dt).itemsize

    Vp = _round_up(V, 8)                                 # sublane-align joints
    PT4 = _block_diag_pt4(P, Vp)

    # Lane-block cap: multiple of 128, clamped so double-buffered in+out blocks
    # stay within ~12 MiB (safe under v5e's 16 MiB default scoped VMEM too).
    cap = max(128, (max_lane_block // 128) * 128)
    vmem_budget = 12 * 1024 * 1024
    cap_by_vmem = max(128, (vmem_budget // (4 * 4 * Vp * itemsize) // 128) * 128)
    cap = min(cap, cap_by_vmem)

    def cost(total_lanes):
        return pl.CostEstimate(
            flops=int((8 * Vp * Vp + 40 * Vp) * total_lanes),
            transcendentals=int(Vp * total_lanes),
            bytes_accessed=int(2 * 4 * Vp * total_lanes * itemsize + PT4.size * 4),
        )

    def cparams(semantics):
        return pltpu.CompilerParams(
            dimension_semantics=semantics,
            vmem_limit_bytes=vmem_limit_bytes,
        )

    if T % 128 == 0:
        # ---- Native-layout path: kernel reads/writes (N, 4, V, T) directly. ----
        xi = x
        if Vp != V:
            xi = jnp.pad(x, ((0, 0), (0, 0), (0, Vp - V), (0, 0)))
        tb = 128
        for m in range(min(cap, T), 127, -128):          # largest 128-multiple dividing T
            if T % m == 0:
                tb = m
                break
        if N * (T // tb) < 2 and tb >= 256:              # keep both v7x TCs busy
            tb //= 2
        grid = (N, T // tb)

        y = pl.pallas_call(
            _rel_quat_kernel,
            out_shape=jax.ShapeDtypeStruct((N, 4, Vp, T), dt),
            grid_spec=pltpu.PrefetchScalarGridSpec(
                num_scalar_prefetch=0,
                grid=grid,
                in_specs=[
                    # PT4 stays resident in VMEM (constant block index).
                    pl.BlockSpec((4 * Vp, 4 * Vp), lambda n, t: (0, 0)),
                    pl.BlockSpec((pl.Squeezed(), 4, Vp, tb),
                                 lambda n, t: (n, 0, 0, t)),
                ],
                out_specs=pl.BlockSpec((pl.Squeezed(), 4, Vp, tb),
                                       lambda n, t: (n, 0, 0, t)),
            ),
            compiler_params=cparams(("parallel", "parallel")),
            cost_estimate=cost(N * T),
        )(PT4, xi)
        if Vp != V:
            y = y[:, :, :V, :]
        return y

    # ---- Fallback path (tiny / unaligned T): flatten batch*time onto lanes. ----
    L = N * T
    lb = min(cap, _round_up(L, 128))
    Lp = _round_up(L, lb)                                # pad up to a multiple of lb
    x2 = jnp.transpose(x, (1, 2, 0, 3)).reshape(4, V, L)  # keep the input dtype
    if Vp != V or Lp != L:
        x2 = jnp.pad(x2, ((0, 0), (0, Vp - V), (0, Lp - L)))
    # Padded lanes/joints are zero -> norm = 1e-4 (finite), sliced off below.

    y = pl.pallas_call(
        _rel_quat_kernel,
        out_shape=jax.ShapeDtypeStruct((4, Vp, Lp), dt),
        grid_spec=pltpu.PrefetchScalarGridSpec(
            num_scalar_prefetch=0,
            grid=(Lp // lb,),
            in_specs=[
                pl.BlockSpec((4 * Vp, 4 * Vp), lambda l: (0, 0)),   # resident
                pl.BlockSpec((4, Vp, lb), lambda l: (0, 0, l)),
            ],
            out_specs=pl.BlockSpec((4, Vp, lb), lambda l: (0, 0, l)),
        ),
        compiler_params=cparams(("parallel",)),
        cost_estimate=cost(Lp),
    )(PT4, x2)

    y = y[:, :V, :L].reshape(4, V, N, T)
    return jnp.transpose(y, (2, 0, 1, 3))


def _reference(x, P):
    """Pure-JAX reference replicating the PyTorch forward."""
    p = jnp.einsum('vw,ncvt->ncwt', P, x)
    p = p.at[:, 0:3].multiply(-1.0)
    p_inv = p / ((p * p).sum(axis=1, keepdims=True) + 0.0001)
    a, b, c, d = p_inv[:, 3], p_inv[:, 0], p_inv[:, 1], p_inv[:, 2]
    t, X, Y, Z = x[:, 3], x[:, 0], x[:, 1], x[:, 2]
    na = a * t - b * X - c * Y - d * Z
    nb = b * t + a * X + c * Z - d * Y
    nc = c * t + a * Y + b * Z - d * X
    nd = d * t + Z * a + c * X - b * Y
    return jnp.stack((nb, nc, nd, na), axis=1)


if __name__ == "__main__":
    V = 16
    # Deterministic one-hot parent-selection matrix: P[parent_of[w], w] = 1.
    parent_of = [0, 0, 1, 2, 3, 0, 5, 6, 7, 0, 9, 10, 11, 0, 13, 14]
    P = jnp.zeros((V, V), dtype=jnp.float32)
    for w, pv in enumerate(parent_of):
        P = P.at[pv, w].set(1.0)

    key = jax.random.PRNGKey(0)
    k1, k2 = jax.random.split(key)

    # Small shape (N=2, C=4, V=16, T=16): exercises the lane-repack fallback path.
    x_small = jax.random.normal(k1, (2, 4, V, 16), dtype=jnp.float32)
    out_small = jax.block_until_ready(relative_quaternion(x_small, P))
    assert out_small.shape == x_small.shape
    assert jnp.allclose(out_small, _reference(x_small, P), atol=1e-5, rtol=1e-5), \
        "fallback-path mismatch vs reference"

    # T multiple of 128: exercises the native-layout (no-repack) path.
    x_big = jax.random.normal(k2, (2, 4, V, 128), dtype=jnp.float32)
    out_big = jax.block_until_ready(relative_quaternion(x_big, P))
    assert out_big.shape == x_big.shape
    assert jnp.allclose(out_big, _reference(x_big, P), atol=1e-5, rtol=1e-5), \
        "native-path mismatch vs reference"

    print("KERNEL_OK")
</pallas_src>

<mosaic_0001>
module attributes {stable_mosaic.version = 11 : i64} {
  func.func @_rel_quat_kernel(%arg0: i32, %arg1: memref<64x64xf32, #tpu.memory_space<vmem>>, %arg2: memref<4x16x128xf32, #tpu.memory_space<vmem>>, %arg3: memref<4x16x128xf32, #tpu.memory_space<vmem>>) attributes {dimension_semantics = [#tpu.dimension_semantics<parallel>], iteration_bounds = array<i64: 1>, scalar_prefetch = 0 : i64, scratch_operands = 0 : i64, tpu.core_type = #tpu.core_type<tc>, window_params = [{pipeline_mode = #tpu.pipeline_mode<synchronous>, transform_indices = @transform_0, window_bounds = array<i64: 64, 64>}, {transform_indices = @transform_1, window_bounds = array<i64: 4, 16, 128>}, {transform_indices = @transform_2, window_bounds = array<i64: 4, 16, 128>}]} {
    %c0 = arith.constant 0 : index
    %c0_0 = arith.constant 0 : index
    %c0_1 = arith.constant 0 : index
    %0 = vector.load %arg2[%c0, %c0_0, %c0_1] : memref<4x16x128xf32, #tpu.memory_space<vmem>>, vector<4x16x128xf32>
    %1 = vector.shape_cast %0 : vector<4x16x128xf32> to vector<64x128xf32>
    %c0_2 = arith.constant 0 : index
    %c0_3 = arith.constant 0 : index
    %2 = vector.load %arg1[%c0_2, %c0_3] : memref<64x64xf32, #tpu.memory_space<vmem>>, vector<64x64xf32>
    %cst = arith.constant dense<0.000000e+00> : vector<64x128xf32>
    %3 = tpu.matmul %2, %1, %cst {dimension_numbers = #tpu.dot_dimension_numbers<[1], [0], [0], [1], [0, 0, 1, 1], [], []>} : vector<64x64xf32>, vector<64x128xf32>, vector<64x128xf32> -> vector<64x128xf32>
    %4 = vector.extract_strided_slice %3 {offsets = [0, 0], sizes = [16, 128], strides = [1, 1]} : vector<64x128xf32> to vector<16x128xf32>
    %5 = vector.extract_strided_slice %3 {offsets = [16, 0], sizes = [16, 128], strides = [1, 1]} : vector<64x128xf32> to vector<16x128xf32>
    %6 = vector.extract_strided_slice %3 {offsets = [32, 0], sizes = [16, 128], strides = [1, 1]} : vector<64x128xf32> to vector<16x128xf32>
    %7 = vector.extract_strided_slice %3 {offsets = [48, 0], sizes = [16, 128], strides = [1, 1]} : vector<64x128xf32> to vector<16x128xf32>
    %8 = arith.mulf %4, %4 : vector<16x128xf32>
    %9 = arith.mulf %5, %5 : vector<16x128xf32>
    %10 = arith.addf %8, %9 : vector<16x128xf32>
    %11 = arith.mulf %6, %6 : vector<16x128xf32>
    %12 = arith.addf %10, %11 : vector<16x128xf32>
    %13 = arith.mulf %7, %7 : vector<16x128xf32>
    %14 = arith.addf %12, %13 : vector<16x128xf32>
    %cst_4 = arith.constant 9.99999974E-5 : f32
    %15 = vector.broadcast %cst_4 : f32 to vector<16x128xf32>
    %16 = arith.addf %14, %15 : vector<16x128xf32>
    %17 = tpu.reciprocal %16 {approx = true} : vector<16x128xf32> -> vector<16x128xf32>
    %18 = arith.mulf %16, %17 : vector<16x128xf32>
    %cst_5 = arith.constant 2.000000e+00 : f32
    %19 = vector.broadcast %cst_5 : f32 to vector<16x128xf32>
    %20 = arith.subf %19, %18 : vector<16x128xf32>
    %21 = arith.mulf %17, %20 : vector<16x128xf32>
    %22 = arith.mulf %16, %21 : vector<16x128xf32>
    %cst_6 = arith.constant 2.000000e+00 : f32
    %23 = vector.broadcast %cst_6 : f32 to vector<16x128xf32>
    %24 = arith.subf %23, %22 : vector<16x128xf32>
    %25 = arith.mulf %21, %24 : vector<16x128xf32>
    %cst_7 = arith.constant 0.000000e+00 : f32
    %26 = vector.broadcast %cst_7 : f32 to vector<16x128xf32>
    %27 = arith.subf %26, %4 : vector<16x128xf32>
    %28 = arith.mulf %27, %25 : vector<16x128xf32>
    %cst_8 = arith.constant 0.000000e+00 : f32
    %29 = vector.broadcast %cst_8 : f32 to vector<16x128xf32>
    %30 = arith.subf %29, %5 : vector<16x128xf32>
    %31 = arith.mulf %30, %25 : vector<16x128xf32>
    %cst_9 = arith.constant 0.000000e+00 : f32
    %32 = vector.broadcast %cst_9 : f32 to vector<16x128xf32>
    %33 = arith.subf %32, %6 : vector<16x128xf32>
    %34 = arith.mulf %33, %25 : vector<16x128xf32>
    %35 = arith.mulf %7, %25 : vector<16x128xf32>
    %36 = vector.extract_strided_slice %0 {offsets = [0, 0, 0], sizes = [1, 16, 128], strides = [1, 1, 1]} : vector<4x16x128xf32> to vector<1x16x128xf32>
    %37 = vector.shape_cast %36 : vector<1x16x128xf32> to vector<16x128xf32>
    %38 = vector.extract_strided_slice %0 {offsets = [1, 0, 0], sizes = [1, 16, 128], strides = [1, 1, 1]} : vector<4x16x128xf32> to vector<1x16x128xf32>
    %39 = vector.shape_cast %38 : vector<1x16x128xf32> to vector<16x128xf32>
    %40 = vector.extract_strided_slice %0 {offsets = [2, 0, 0], sizes = [1, 16, 128], strides = [1, 1, 1]} : vector<4x16x128xf32> to vector<1x16x128xf32>
    %41 = vector.shape_cast %40 : vector<1x16x128xf32> to vector<16x128xf32>
    %42 = vector.extract_strided_slice %0 {offsets = [3, 0, 0], sizes = [1, 16, 128], strides = [1, 1, 1]} : vector<4x16x128xf32> to vector<1x16x128xf32>
    %43 = vector.shape_cast %42 : vector<1x16x128xf32> to vector<16x128xf32>
    %44 = arith.mulf %35, %43 : vector<16x128xf32>
    %45 = arith.mulf %28, %37 : vector<16x128xf32>
    %46 = arith.subf %44, %45 : vector<16x128xf32>
    %47 = arith.mulf %31, %39 : vector<16x128xf32>
    %48 = arith.subf %46, %47 : vector<16x128xf32>
    %49 = arith.mulf %34, %41 : vector<16x128xf32>
    %50 = arith.subf %48, %49 : vector<16x128xf32>
    %51 = arith.mulf %28, %43 : vector<16x128xf32>
    %52 = arith.mulf %35, %37 : vector<16x128xf32>
    %53 = arith.addf %51, %52 : vector<16x128xf32>
    %54 = arith.mulf %31, %41 : vector<16x128xf32>
    %55 = arith.addf %53, %54 : vector<16x128xf32>
    %56 = arith.mulf %34, %39 : vector<16x128xf32>
    %57 = arith.subf %55, %56 : vector<16x128xf32>
    %58 = arith.mulf %31, %43 : vector<16x128xf32>
    %59 = arith.mulf %35, %39 : vector<16x128xf32>
    %60 = arith.addf %58, %59 : vector<16x128xf32>
    %61 = arith.mulf %28, %41 : vector<16x128xf32>
    %62 = arith.addf %60, %61 : vector<16x128xf32>
    %63 = arith.mulf %34, %37 : vector<16x128xf32>
    %64 = arith.subf %62, %63 : vector<16x128xf32>
    %65 = arith.mulf %34, %43 : vector<16x128xf32>
    %66 = arith.mulf %41, %35 : vector<16x128xf32>
    %67 = arith.addf %65, %66 : vector<16x128xf32>
    %68 = arith.mulf %31, %37 : vector<16x128xf32>
    %69 = arith.addf %67, %68 : vector<16x128xf32>
    %70 = arith.mulf %28, %39 : vector<16x128xf32>
    %71 = arith.subf %69, %70 : vector<16x128xf32>
    %c0_10 = arith.constant 0 : index
    %c0_11 = arith.constant 0 : index
    %c0_12 = arith.constant 0 : index
    %72 = vector.load %arg3[%c0_10, %c0_11, %c0_12] : memref<4x16x128xf32, #tpu.memory_space<vmem>>, vector<1x16x128xf32>
    %73 = vector.shape_cast %72 : vector<1x16x128xf32> to vector<16x128xf32>
    %74 = vector.shape_cast %57 : vector<16x128xf32> to vector<1x16x128xf32>
    tpu.vector_store %arg3[%c0_10, %c0_11, %c0_12], %74 {strides = array<i32>} : memref<4x16x128xf32, #tpu.memory_space<vmem>>, vector<1x16x128xf32>,
    %c1 = arith.constant 1 : index
    %c0_13 = arith.constant 0 : index
    %c0_14 = arith.constant 0 : index
    %75 = vector.load %arg3[%c1, %c0_13, %c0_14] : memref<4x16x128xf32, #tpu.memory_space<vmem>>, vector<1x16x128xf32>
    %76 = vector.shape_cast %75 : vector<1x16x128xf32> to vector<16x128xf32>
    %77 = vector.shape_cast %64 : vector<16x128xf32> to vector<1x16x128xf32>
    tpu.vector_store %arg3[%c1, %c0_13, %c0_14], %77 {strides = array<i32>} : memref<4x16x128xf32, #tpu.memory_space<vmem>>, vector<1x16x128xf32>,
    %c2 = arith.constant 2 : index
    %c0_15 = arith.constant 0 : index
    %c0_16 = arith.constant 0 : index
    %78 = vector.load %arg3[%c2, %c0_15, %c0_16] : memref<4x16x128xf32, #tpu.memory_space<vmem>>, vector<1x16x128xf32>
    %79 = vector.shape_cast %78 : vector<1x16x128xf32> to vector<16x128xf32>
    %80 = vector.shape_cast %71 : vector<16x128xf32> to vector<1x16x128xf32>
    tpu.vector_store %arg3[%c2, %c0_15, %c0_16], %80 {strides = array<i32>} : memref<4x16x128xf32, #tpu.memory_space<vmem>>, vector<1x16x128xf32>,
    %c3 = arith.constant 3 : index
    %c0_17 = arith.constant 0 : index
    %c0_18 = arith.constant 0 : index
    %81 = vector.load %arg3[%c3, %c0_17, %c0_18] : memref<4x16x128xf32, #tpu.memory_space<vmem>>, vector<1x16x128xf32>
    %82 = vector.shape_cast %81 : vector<1x16x128xf32> to vector<16x128xf32>
    %83 = vector.shape_cast %50 : vector<16x128xf32> to vector<1x16x128xf32>
    tpu.vector_store %arg3[%c3, %c0_17, %c0_18], %83 {strides = array<i32>} : memref<4x16x128xf32, #tpu.memory_space<vmem>>, vector<1x16x128xf32>,
    return
  }
  func.func @transform_0(%arg0: i32) -> (i32, i32) {
    %c0_i32 = arith.constant 0 : i32
    %c0_i32_0 = arith.constant 0 : i32
    %c0_i32_1 = arith.constant 0 : i32
    return %c0_i32, %c0_i32_0 : i32, i32
  }
  func.func @transform_1(%arg0: i32) -> (i32, i32, i32) {
    %c0_i32 = arith.constant 0 : i32
    %c0_i32_0 = arith.constant 0 : i32
    %c0_i32_1 = arith.constant 0 : i32
    return %c0_i32, %c0_i32_0, %arg0 : i32, i32, i32
  }
  func.func @transform_2(%arg0: i32) -> (i32, i32, i32) {
    %c0_i32 = arith.constant 0 : i32
    %c0_i32_0 = arith.constant 0 : i32
    %c0_i32_1 = arith.constant 0 : i32
    return %c0_i32, %c0_i32_0, %arg0 : i32, i32, i32
  }
}

</mosaic_0001>

<bundles_post_ra>
// kernel: relative_quaternion.1
= control target key start
LH: loop header
LB: loop body
LE: loop exit
PB: predicated region body
PF: predicated region fallthrough
CT: control target
= control target key end

     0   :  { %vm27_vm0 = vcmask 523264   ;;  %s515_s1 = inlined_call_operand.vmem [shape: f32[4,16,128], index: 1, kind: input, shape index: {}]   ;;  %s516_s0 = inlined_call_operand.vmem [shape: f32[64,64], index: 0, kind: input, shape index: {}]   ;;  %s517_s2 = inlined_call_operand.vmem [shape: f32[4,16,128], index: 2, kind: output, shape index: {}]  }
   0x1   :  { %v376_v0 = vld [vmem:[%s515_s1] sm:$0xff]  ;;  %v381_v1 = vld [vmem:[%s515_s1 + $0x8] sm:$0xff]  ;;  %v386_v2 = vld [vmem:[%s515_s1 + $0x10] sm:$0xff] }
   0x2   :  { %v330_v3 = vpack.c.bf16 %v381_v1, %v376_v0  ;;  %v393_v4 = vld [vmem:[%s515_s1 + $0x18] sm:$0xff]  ;;  %v400_v6 = vld [vmem:[%s515_s1 + $0x20] sm:$0xff]  ;;  %v405_v7 = vld [vmem:[%s515_s1 + $0x28] sm:$0xff] }
   0x3   :  { %v334_v5 = vpack.c.bf16 %v393_v4, %v386_v2  ;;  %v19_v8 = vld [vmem:[%s516_s0] sm:$0xff]  ;;  %v338_v10 = vpack.c.bf16 %v405_v7, %v400_v6  ;;  %v418_v11 = vld [vmem:[%s515_s1 + $0x30] sm:$0xff]  ;;  %v423_v12 = vld [vmem:[%s515_s1 + $0x38] sm:$0xff] }
   0x4   :  { %331 = vmatprep.subr.bf16.mxu0 %v330_v3  ;;  %346 = vmatprep.subr.bf16.mxu1 %v330_v3  ;;  %v23_v9 = vld [vmem:[%s516_s0 + $0x20] sm:$0xff]  ;;  %v342_v13 = vpack.c.bf16 %v423_v12, %v418_v11  ;;  %v20_v14 = vld [vmem:[%s516_s0 + $0x8] sm:$0xff]  ;;  %v21_v16 = vld [vmem:[%s516_s0 + $0x10] sm:$0xff] }
   0x5   :  { %333 = vmatpush3.bf16.msra.mxu0 %v330_v3  ;;  %350 = vmatpush3.bf16.msra.mxu1 %v330_v3  ;;  %v24_v15 = vld [vmem:[%s516_s0 + $0x28] sm:$0xff]  ;;  %v25_v17 = vld [vmem:[%s516_s0 + $0x30] sm:$0xff]  ;;  %v22_v18 = vld [vmem:[%s516_s0 + $0x18] sm:$0xff] }
   0x6   :  { %335 = vmatprep.subr.bf16.mxu0 %v334_v5  ;;  %347 = vmatprep.subr.bf16.mxu1 %v334_v5  ;;  %v26_v19 = vld [vmem:[%s516_s0 + $0x38] sm:$0xff] }
   0x7   :  { %318 = vmatprep.mubr.msk.f32.mxu0 %vm27_vm0, %v19_v8  ;;  %324 = vmatprep.mubr.msk.f32.mxu1 %vm27_vm0, %v23_v9 }
   0x9   :  { %337 = vmatpush3.bf16.msra.mxu0 %v334_v5  ;;  %351 = vmatpush3.bf16.msra.mxu1 %v334_v5 }
   0xa   :  { %339 = vmatprep.subr.bf16.mxu0 %v338_v10  ;;  %348 = vmatprep.subr.bf16.mxu1 %v338_v10 }
   0xd   :  { %341 = vmatpush3.bf16.msra.mxu0 %v338_v10  ;;  %352 = vmatpush3.bf16.msra.mxu1 %v338_v10 }
   0xe   :  { %343 = vmatprep.subr.bf16.mxu0 %v342_v13  ;;  %349 = vmatprep.subr.bf16.mxu1 %v342_v13 }
  0x11   :  { %345 = vmatpush3.bf16.msra.mxu0 %v342_v13  ;;  %353 = vmatpush3.bf16.msra.mxu1 %v342_v13 }
  0x14   :  { %319 = vmatmul.mubr.msk.f32.vlgmr.msra.gmra.mrb[0].mxu0 %vm27_vm0, %v20_v14  ;;  %325 = vmatmul.mubr.msk.f32.vlgmr.msra.gmra.mrb[0].mxu1 %vm27_vm0, %v24_v15 }
  0x15   :  { %321 = vmatprep.mubr.msk.f32.mxu0 %vm27_vm0, %v21_v16  ;;  %327 = vmatprep.mubr.msk.f32.mxu1 %vm27_vm0, %v25_v17 }
  0x18   :  { %322 = vmatmul.mubr.msk.f32.gmra.mrb[2].mxu0 %vm27_vm0, %v22_v18  ;;  %328 = vmatmul.mubr.msk.f32.gmra.mrb[2].mxu1 %vm27_vm0, %v26_v19 }
  0xe7   :  { %v320_v20 = vpop.f32.mrb[0].mxu0  ;;  %v326_v21 = vpop.f32.mrb[0].mxu1 }
  0xe8   :  { %v118_v22 = vpop.f32.mrb[1].mxu0  ;;  %v138_v23 = vpop.f32.mrb[1].mxu1  ;;  %v158_v26 = vmul.f32 %v320_v20, %v320_v20  ;;  %v164_v32 = vmul.f32 %v326_v21, %v326_v21  ;;  %v188_v56 = vsub.f32 0.0, %v320_v20  ;;  %v196_v57 = vsub.f32 0.0, %v326_v21 }
  0xe9   :  { %v157_v30 = vmul.f32 %v118_v22, %v118_v22  ;;  %v163_v35 = vmul.f32 %v138_v23, %v138_v23  ;;  %v187_v60 = vsub.f32 0.0, %v118_v22  ;;  %v195_v61 = vsub.f32 0.0, %v138_v23 }
  0xeb   :  { %v323_v24 = vpop.f32.mrb[2].mxu0  ;;  %v329_v25 = vpop.f32.mrb[2].mxu1 }
  0xec   :  { %v160_v27 = vmul.f32 %v323_v24, %v323_v24  ;;  %v128_v28 = vpop.f32.mrb[3].mxu0  ;;  %v148_v29 = vpop.f32.mrb[3].mxu1  ;;  %v168_v34 = vmul.f32 %v329_v25, %v329_v25  ;;  %v192_v58 = vsub.f32 0.0, %v323_v24 }
  0xed   :  { %v159_v31 = vmul.f32 %v128_v28, %v128_v28  ;;  %v167_v37 = vmul.f32 %v148_v29, %v148_v29  ;;  %v191_v62 = vsub.f32 0.0, %v128_v28 }
  0xee   :  { %v162_v33 = vadd.f32 %v160_v27, %v158_v26 }
  0xef   :  { %v161_v36 = vadd.f32 %v159_v31, %v157_v30 }
  0xf0   :  { %v166_v38 = vadd.f32 %v164_v32, %v162_v33 }
  0xf1   :  { %v165_v39 = vadd.f32 %v163_v35, %v161_v36 }
  0xf2   :  { %v170_v40 = vadd.f32 %v168_v34, %v166_v38 }
  0xf3   :  { %v169_v41 = vadd.f32 %v167_v37, %v165_v39 }
  0xf4   :  { %v172_v42 = vadd.f32 0.0001, %v170_v40 }
  0xf5   :  { %v171_v43 = vadd.f32 0.0001, %v169_v41 }
  0xf6   :  { %354 = vrcp.f32 %v172_v42 }
  0xf7   :  { %356 = vrcp.f32 %v171_v43 }
 0x100   :  { %v355_v44 = vpop.eup %354 }
 0x101   :  { %v357_v45 = vpop.eup %356  ;;  %v176_v46 = vmul.f32 %v355_v44, %v172_v42 }
 0x102   :  { %v175_v47 = vmul.f32 %v357_v45, %v171_v43 }
 0x103   :  { %v178_v48 = vsub.f32 2.0, %v176_v46 }
 0x104   :  { %v177_v49 = vsub.f32 2.0, %v175_v47 }
 0x105   :  { %v180_v50 = vmul.f32 %v355_v44, %v178_v48 }
 0x106   :  { %v179_v51 = vmul.f32 %v357_v45, %v177_v49 }
 0x107   :  { %v182_v52 = vmul.f32 %v180_v50, %v172_v42 }
 0x108   :  { %v181_v53 = vmul.f32 %v179_v51, %v171_v43 }
 0x109   :  { %v184_v54 = vsub.f32 2.0, %v182_v52 }
 0x10a   :  { %v183_v55 = vsub.f32 2.0, %v181_v53 }
 0x10b   :  { %v186_v59 = vmul.f32 %v184_v54, %v180_v50 }
 0x10c   :  { %v185_v63 = vmul.f32 %v183_v55, %v179_v51 }
 0x10d   :  { %v190_v3 = vmul.f32 %v188_v56, %v186_v59  ;;  %v194_v5 = vmul.f32 %v192_v58, %v186_v59  ;;  %v198_v8 = vmul.f32 %v196_v57, %v186_v59  ;;  %v200_v9 = vmul.f32 %v329_v25, %v186_v59 }
 0x10e   :  { %v453_v10 = vmul.f32 %v187_v60, %v185_v63  ;;  %v193_v13 = vmul.f32 %v191_v62, %v185_v63  ;;  %v197_v14 = vmul.f32 %v195_v61, %v185_v63  ;;  %v199_v15 = vmul.f32 %v185_v63, %v148_v29 }
 0x10f   :  { %v202_v16 = vmul.f32 %v200_v9, %v423_v12  ;;  %v204_v17 = vmul.f32 %v190_v3, %v381_v1  ;;  %v208_v18 = vmul.f32 %v194_v5, %v393_v4  ;;  %v212_v19 = vmul.f32 %v198_v8, %v405_v7 }
 0x110   :  { %v216_v20 = vmul.f32 %v190_v3, %v423_v12  ;;  %v218_v21 = vmul.f32 %v200_v9, %v381_v1  ;;  %v222_v22 = vmul.f32 %v194_v5, %v405_v7  ;;  %v226_v24 = vmul.f32 %v198_v8, %v393_v4 }
 0x111   :  { %v206_v23 = vsub.f32 %v202_v16, %v204_v17  ;;  %v230_v25 = vmul.f32 %v194_v5, %v423_v12  ;;  %v232_v26 = vmul.f32 %v200_v9, %v393_v4  ;;  %v236_v28 = vmul.f32 %v190_v3, %v405_v7 }
 0x112   :  { %v220_v27 = vadd.f32 %v218_v21, %v216_v20  ;;  %v244_v29 = vmul.f32 %v198_v8, %v423_v12  ;;  %v246_v30 = vmul.f32 %v200_v9, %v405_v7  ;;  %v240_v33 = vmul.f32 %v198_v8, %v381_v1 }
 0x113   :  { %v210_v31 = vsub.f32 %v206_v23, %v208_v18  ;;  %v234_v32 = vadd.f32 %v232_v26, %v230_v25  ;;  %v250_v34 = vmul.f32 %v194_v5, %v381_v1  ;;  %v201_v37 = vmul.f32 %v199_v15, %v418_v11 }
 0x114   :  { %v224_v35 = vadd.f32 %v222_v22, %v220_v27  ;;  %v248_v36 = vadd.f32 %v246_v30, %v244_v29  ;;  %v203_v38 = vmul.f32 %v453_v10, %v376_v0  ;;  %v254_v41 = vmul.f32 %v190_v3, %v393_v4 }
 0x115   :  { %v214_v39 = vsub.f32 %v210_v31, %v212_v19  ;;  %v238_v40 = vadd.f32 %v236_v28, %v234_v32  ;;  %v207_v12 = vmul.f32 %v193_v13, %v386_v2  ;;  %v215_v44 = vmul.f32 %v453_v10, %v418_v11 }
 0x116   :  { %v228_v7 = vsub.f32 %v224_v35, %v226_v24  ;;  %v252_v42 = vadd.f32 %v250_v34, %v248_v36  ;;  %v205_v43 = vsub.f32 %v201_v37, %v203_v38  ;;  %v211_v45 = vmul.f32 %v197_v14, %v400_v6 }
 0x117   :  { %v242_v1 = vsub.f32 %v238_v40, %v240_v33  ;;  %285 = vst [vmem:[%s517_s2 + $0x38] sm:$0xff] %v214_v39  ;;  %v217_v46 = vmul.f32 %v199_v15, %v376_v0  ;;  %v229_v48 = vmul.f32 %v193_v13, %v418_v11  ;;  %v231_v49 = vmul.f32 %v199_v15, %v386_v2 }
 0x118   :  { %v256_v47 = vsub.f32 %v252_v42, %v254_v41  ;;  %258 = vst [vmem:[%s517_s2 + $0x8] sm:$0xff] %v228_v7  ;;  %v209_v4 = vsub.f32 %v205_v43, %v207_v12  ;;  %v221_v51 = vmul.f32 %v193_v13, %v400_v6  ;;  %v243_v52 = vmul.f32 %v197_v14, %v418_v11 }
 0x119   :  { %281 = vst [vmem:[%s517_s2 + $0x18] sm:$0xff] %v242_v1  ;;  %v219_v50 = vadd.f32 %v217_v46, %v215_v44  ;;  %v233_v54 = vadd.f32 %v231_v49, %v229_v48  ;;  %v235_v55 = vmul.f32 %v453_v10, %v400_v6  ;;  %v245_v56 = vmul.f32 %v199_v15, %v400_v6 }
 0x11a   :  { %283 = vst [vmem:[%s517_s2 + $0x28] sm:$0xff] %v256_v47  ;;  %v213_v53 = vsub.f32 %v209_v4, %v211_v45  ;;  %v225_v58 = vmul.f32 %v197_v14, %v386_v2  ;;  %v239_v60 = vmul.f32 %v197_v14, %v376_v0  ;;  %v249_v11 = vmul.f32 %v193_v13, %v376_v0 }
 0x11b   :  { %v223_v57 = vadd.f32 %v221_v51, %v219_v50  ;;  %v237_v59 = vadd.f32 %v235_v55, %v233_v54  ;;  %v247_v61 = vadd.f32 %v245_v56, %v243_v52  ;;  %v253_v5 = vmul.f32 %v453_v10, %v386_v2 }
 0x11c   :  { %284 = vst [vmem:[%s517_s2 + $0x30] sm:$0xff] %v213_v53 }
 0x11d   :  { %v227_v62 = vsub.f32 %v223_v57, %v225_v58  ;;  %v241_v63 = vsub.f32 %v237_v59, %v239_v60  ;;  %v251_v3 = vadd.f32 %v249_v11, %v247_v61 }
 0x11f   :  { %257 = vst [vmem:[%s517_s2] sm:$0xff] %v227_v62  ;;  %v255_v6 = vsub.f32 %v251_v3, %v253_v5  ;;  %280 = vst [vmem:[%s517_s2 + $0x10] sm:$0xff] %v241_v63 }
 0x121   :  { %282 = vst [vmem:[%s517_s2 + $0x20] sm:$0xff] %v255_v6 }

</bundles_post_ra>
